<compile_context>
chip_gen: v6e
topology: v6e:2x2x1
jax: 0.10.0
libtpu: 0.0.40
codegen_flags: <defaults>
</compile_context>

<pallas_src>
import jax
import jax.numpy as jnp
from jax.experimental import pallas as pl
from jax.experimental.pallas import tpu as pltpu


def _round_up(n: int, m: int) -> int:
    return ((n + m - 1) // m) * m


def _choose_batch_tile(batch: int, block_b: int) -> int:
    """Pick a lane-aligned batch tile; prefer >= 2 grid steps (v7x megacore)."""
    if batch <= 128:
        return batch                       # single full block (block dim == array dim)
    tb = _round_up(min(block_b, batch), 128)
    half = _round_up(pl.cdiv(batch, 2), 128)
    return max(128, min(tb, half))


def qnetwork_kernel(x_ref, a_ref, w1o_t_ref, w1a_t_ref, b1_ref, w2_t_ref,
                    b2_ref, w3_t_ref, b3_ref, o_ref):
    """One batch tile. x (TB, obs), a (TB, act) -> lane-dense q row (1, TB)."""
    cdt = w1o_t_ref.dtype  # MXU compute dtype (bf16 default, f32 for exact path)

    # ---- Layer 1: fused concat, batch-on-lanes.  Contract dim 1 of both
    # operands: W1o^T (H, obs) x x (TB, obs) -> (H, TB); the small x/a tiles are
    # transposed implicitly (cheap), f32 accumulation on the MXU.
    acc1 = jax.lax.dot_general(
        w1o_t_ref[...], x_ref[...].astype(cdt),
        dimension_numbers=(((1,), (1,)), ((), ())),
        preferred_element_type=jnp.float32)
    acc1 = acc1 + jax.lax.dot_general(
        w1a_t_ref[...], a_ref[...].astype(cdt),
        dimension_numbers=(((1,), (1,)), ((), ())),
        preferred_element_type=jnp.float32)
    h1 = jnp.maximum(acc1 + b1_ref[...], 0.0)              # (H, TB) f32

    # ---- Layer 2: W2^T (H, H) @ h1 (H, TB) -> (H, TB), f32 accumulation.
    acc2 = jnp.dot(w2_t_ref[...], h1.astype(cdt),
                   preferred_element_type=jnp.float32)
    h2 = jnp.maximum(acc2 + b2_ref[...], 0.0)               # (H, TB) f32

    # ---- Layer 3: W3^T (1, H) @ h2 (H, TB) -> lane-dense (1, TB), no transpose.
    q = jnp.dot(w3_t_ref[...], h2.astype(cdt),
                preferred_element_type=jnp.float32)
    o_ref[...] = (q + b3_ref[0, 0]).astype(o_ref.dtype)     # scalar bias from SMEM


def prepare_params(params, obs_dims: int, *, compute_dtype=jnp.bfloat16):
    """Split/transpose/cast the weights once (do this outside the hot loop)."""
    w1, b1, w2, b2, w3, b3 = params
    hidden = w1.shape[1]
    w1o_t = w1[:obs_dims].T.astype(compute_dtype)            # (hidden, obs)
    w1a_t = w1[obs_dims:].T.astype(compute_dtype)            # (hidden, act)
    w2_t = w2.T.astype(compute_dtype)                        # (hidden, hidden)
    w3_t = w3.reshape(1, hidden).astype(compute_dtype)       # (1, hidden)
    b1c = b1.reshape(hidden, 1).astype(jnp.float32)          # (hidden, 1)
    b2c = b2.reshape(hidden, 1).astype(jnp.float32)          # (hidden, 1)
    b3c = b3.reshape(1, 1).astype(jnp.float32)               # (1, 1) SMEM scalar
    return (w1o_t, w1a_t, b1c, w2_t, b2c, w3_t, b3c)


def qnetwork_apply(x, a, prepared, *, block_b=2048):
    """x: (B, obs), a: (B, act), prepared = prepare_params(...) -> q: (B, 1) f32."""
    w1o_t, w1a_t, b1c, w2_t, b2c, w3_t, b3c = prepared
    B, obs = x.shape
    act = a.shape[1]
    hidden = w2_t.shape[0]

    tb = _choose_batch_tile(B, block_b)
    nb = pl.cdiv(B, tb)

    def const_spec(shape):
        # Full-array block, same block every grid step -> stays VMEM-resident.
        return pl.BlockSpec(shape, lambda i, _n=len(shape): (0,) * _n)

    flops = int(2 * B * ((obs + act) * hidden + hidden * hidden + hidden))
    bytes_accessed = int(
        B * (obs + act) * x.dtype.itemsize + B * 4
        + sum(int(p.size) * p.dtype.itemsize for p in prepared))

    out = pl.pallas_call(
        qnetwork_kernel,
        out_shape=jax.ShapeDtypeStruct((1, B), jnp.float32),
        grid=(nb,),
        in_specs=[
            pl.BlockSpec((tb, obs), lambda i: (i, 0)),            # x tile
            pl.BlockSpec((tb, act), lambda i: (i, 0)),            # a tile
            const_spec(w1o_t.shape),
            const_spec(w1a_t.shape),
            const_spec(b1c.shape),
            const_spec(w2_t.shape),
            const_spec(b2c.shape),
            const_spec(w3_t.shape),
            pl.BlockSpec(memory_space=pltpu.MemorySpace.SMEM),    # b3 scalar
        ],
        out_specs=pl.BlockSpec((1, tb), lambda i: (0, i)),        # lane-dense q row
        compiler_params=pltpu.CompilerParams(
            dimension_semantics=("parallel",),
            vmem_limit_bytes=32 * 1024 * 1024),
        cost_estimate=pl.CostEstimate(flops=flops, transcendentals=0,
                                      bytes_accessed=bytes_accessed),
    )(x, a, w1o_t, w1a_t, b1c, w2_t, b2c, w3_t, b3c)

    # (1, B) lane-major row -> (B, 1); no padding to drop, no extra HBM pass.
    return out.reshape(B, 1)


def qnetwork_forward(x, a, params, *, compute_dtype=jnp.bfloat16, block_b=2048):
    """Convenience wrapper (prepare + apply). Prefer prepare_params once + jit."""
    prepared = prepare_params(params, x.shape[1], compute_dtype=compute_dtype)
    return qnetwork_apply(x, a, prepared, block_b=block_b)


def init_params(key, obs_dims, hidden_dims, action_dims):
    """nn.Linear-style init, weights stored as (in_features, out_features)."""
    dims = [
        (obs_dims + action_dims, hidden_dims),
        (hidden_dims, hidden_dims),
        (hidden_dims, 1),
    ]
    params = []
    for fan_in, fan_out in dims:
        key, kw, kb = jax.random.split(key, 3)
        bound = 1.0 / jnp.sqrt(float(fan_in))
        params.append(jax.random.uniform(kw, (fan_in, fan_out), jnp.float32, -bound, bound))
        params.append(jax.random.uniform(kb, (1, fan_out), jnp.float32, -bound, bound))
    return tuple(params)


def reference_forward(x, a, params):
    w1, b1, w2, b2, w3, b3 = params
    cat = jnp.concatenate([x, a], axis=1)
    h1 = jnp.maximum(cat @ w1 + b1, 0.0)
    h2 = jnp.maximum(h1 @ w2 + b2, 0.0)
    return h2 @ w3 + b3


if __name__ == "__main__":
    obs_dims, hidden_dims, action_dims = 8, 32, 4
    batch = 8

    key = jax.random.PRNGKey(0)
    kx, ka, kp, kx2, ka2 = jax.random.split(key, 5)
    x = jax.random.normal(kx, (batch, obs_dims), jnp.float32)
    a = jax.random.normal(ka, (batch, action_dims), jnp.float32)
    params = init_params(kp, obs_dims, hidden_dims, action_dims)

    ref = reference_forward(x, a, params)

    # Exact-semantics path (f32 compute) -- tight check against the pure-JAX ref.
    prep_f32 = prepare_params(params, obs_dims, compute_dtype=jnp.float32)
    fwd_f32 = jax.jit(lambda xx, aa: qnetwork_apply(xx, aa, prep_f32))
    q_f32 = jax.block_until_ready(fwd_f32(x, a))
    assert q_f32.shape == (batch, 1)
    assert jnp.allclose(q_f32, ref, atol=1e-4, rtol=1e-4)

    # Default fast path (bf16 MXU, f32 accumulation) -- relaxed tolerance.
    prep_bf16 = prepare_params(params, obs_dims, compute_dtype=jnp.bfloat16)
    fwd_bf16 = jax.jit(lambda xx, aa: qnetwork_apply(xx, aa, prep_bf16))
    q_bf16 = jax.block_until_ready(fwd_bf16(x, a))
    assert q_bf16.shape == (batch, 1)
    assert jnp.allclose(q_bf16, ref, atol=3e-2, rtol=3e-2)

    # Multi-step grid + ragged batch: tile capped at ceil(B/2) rounded to 128
    # lanes (two grid steps), partial edge blocks, no jnp.pad HBM copy.
    batch2 = 200
    x2 = jax.random.normal(kx2, (batch2, obs_dims), jnp.float32)
    a2 = jax.random.normal(ka2, (batch2, action_dims), jnp.float32)
    ref2 = reference_forward(x2, a2, params)
    fwd2 = jax.jit(lambda xx, aa: qnetwork_apply(xx, aa, prep_f32))
    q2 = jax.block_until_ready(fwd2(x2, a2))
    assert q2.shape == (batch2, 1)
    assert jnp.allclose(q2, ref2, atol=1e-4, rtol=1e-4)

    print("KERNEL_OK")
</pallas_src>

<mosaic_0001>
module attributes {stable_mosaic.version = 11 : i64} {
  func.func @qnetwork_kernel(%arg0: i32, %arg1: memref<8x8xf32, #tpu.memory_space<vmem>>, %arg2: memref<8x4xf32, #tpu.memory_space<vmem>>, %arg3: memref<32x8xf32, #tpu.memory_space<vmem>>, %arg4: memref<32x4xf32, #tpu.memory_space<vmem>>, %arg5: memref<32x1xf32, #tpu.memory_space<vmem>>, %arg6: memref<32x32xf32, #tpu.memory_space<vmem>>, %arg7: memref<32x1xf32, #tpu.memory_space<vmem>>, %arg8: memref<1x32xf32, #tpu.memory_space<vmem>>, %arg9: memref<1x1xf32, #tpu.memory_space<smem>>, %arg10: memref<1x8xf32, #tpu.memory_space<vmem>>) attributes {dimension_semantics = [#tpu.dimension_semantics<parallel>], iteration_bounds = array<i64: 1>, scalar_prefetch = 0 : i64, scratch_operands = 0 : i64, tpu.core_type = #tpu.core_type<tc>, window_params = [{transform_indices = @transform_0, window_bounds = array<i64: 8, 8>}, {transform_indices = @transform_1, window_bounds = array<i64: 8, 4>}, {pipeline_mode = #tpu.pipeline_mode<synchronous>, transform_indices = @transform_2, window_bounds = array<i64: 32, 8>}, {pipeline_mode = #tpu.pipeline_mode<synchronous>, transform_indices = @transform_3, window_bounds = array<i64: 32, 4>}, {pipeline_mode = #tpu.pipeline_mode<synchronous>, transform_indices = @transform_4, window_bounds = array<i64: 32, 1>}, {pipeline_mode = #tpu.pipeline_mode<synchronous>, transform_indices = @transform_5, window_bounds = array<i64: 32, 32>}, {pipeline_mode = #tpu.pipeline_mode<synchronous>, transform_indices = @transform_6, window_bounds = array<i64: 32, 1>}, {pipeline_mode = #tpu.pipeline_mode<synchronous>, transform_indices = @transform_7, window_bounds = array<i64: 1, 32>}, {transform_indices = @transform_8, window_bounds = array<i64: 1, 1>}, {transform_indices = @transform_9, window_bounds = array<i64: 1, 8>}]} {
    %c0 = arith.constant 0 : index
    %c0_0 = arith.constant 0 : index
    %0 = vector.load %arg3[%c0, %c0_0] : memref<32x8xf32, #tpu.memory_space<vmem>>, vector<32x8xf32>
    %c0_1 = arith.constant 0 : index
    %c0_2 = arith.constant 0 : index
    %1 = vector.load %arg1[%c0_1, %c0_2] : memref<8x8xf32, #tpu.memory_space<vmem>>, vector<8x8xf32>
    %cst = arith.constant dense<0.000000e+00> : vector<32x8xf32>
    %2 = tpu.matmul %0, %1, %cst {dimension_numbers = #tpu.dot_dimension_numbers<[1], [1], [0], [0], [0, 0, 1, 0], [], []>} : vector<32x8xf32>, vector<8x8xf32>, vector<32x8xf32> -> vector<32x8xf32>
    %c0_3 = arith.constant 0 : index
    %c0_4 = arith.constant 0 : index
    %3 = vector.load %arg4[%c0_3, %c0_4] : memref<32x4xf32, #tpu.memory_space<vmem>>, vector<32x4xf32>
    %c0_5 = arith.constant 0 : index
    %c0_6 = arith.constant 0 : index
    %4 = vector.load %arg2[%c0_5, %c0_6] : memref<8x4xf32, #tpu.memory_space<vmem>>, vector<8x4xf32>
    %cst_7 = arith.constant dense<0.000000e+00> : vector<32x8xf32>
    %5 = tpu.matmul %3, %4, %cst_7 {dimension_numbers = #tpu.dot_dimension_numbers<[1], [1], [0], [0], [0, 0, 1, 0], [], []>} : vector<32x4xf32>, vector<8x4xf32>, vector<32x8xf32> -> vector<32x8xf32>
    %6 = arith.addf %2, %5 : vector<32x8xf32>
    %c0_8 = arith.constant 0 : index
    %c0_9 = arith.constant 0 : index
    %7 = vector.load %arg5[%c0_8, %c0_9] : memref<32x1xf32, #tpu.memory_space<vmem>>, vector<32x1xf32>
    %8 = vector.broadcast %7 : vector<32x1xf32> to vector<32x8xf32>
    %9 = arith.addf %6, %8 : vector<32x8xf32>
    %cst_10 = arith.constant 0.000000e+00 : f32
    %10 = vector.broadcast %cst_10 : f32 to vector<32x8xf32>
    %11 = arith.maximumf %9, %10 : vector<32x8xf32>
    %c0_11 = arith.constant 0 : index
    %c0_12 = arith.constant 0 : index
    %12 = vector.load %arg6[%c0_11, %c0_12] : memref<32x32xf32, #tpu.memory_space<vmem>>, vector<32x32xf32>
    %cst_13 = arith.constant dense<0.000000e+00> : vector<32x8xf32>
    %13 = tpu.matmul %12, %11, %cst_13 {dimension_numbers = #tpu.dot_dimension_numbers<[1], [0], [0], [1], [0, 0, 1, 1], [], []>} : vector<32x32xf32>, vector<32x8xf32>, vector<32x8xf32> -> vector<32x8xf32>
    %c0_14 = arith.constant 0 : index
    %c0_15 = arith.constant 0 : index
    %14 = vector.load %arg7[%c0_14, %c0_15] : memref<32x1xf32, #tpu.memory_space<vmem>>, vector<32x1xf32>
    %15 = vector.broadcast %14 : vector<32x1xf32> to vector<32x8xf32>
    %16 = arith.addf %13, %15 : vector<32x8xf32>
    %cst_16 = arith.constant 0.000000e+00 : f32
    %17 = vector.broadcast %cst_16 : f32 to vector<32x8xf32>
    %18 = arith.maximumf %16, %17 : vector<32x8xf32>
    %c0_17 = arith.constant 0 : index
    %c0_18 = arith.constant 0 : index
    %19 = vector.load %arg8[%c0_17, %c0_18] : memref<1x32xf32, #tpu.memory_space<vmem>>, vector<1x32xf32>
    %cst_19 = arith.constant dense<0.000000e+00> : vector<1x8xf32>
    %20 = tpu.matmul %19, %18, %cst_19 {dimension_numbers = #tpu.dot_dimension_numbers<[1], [0], [0], [1], [0, 0, 1, 1], [], []>} : vector<1x32xf32>, vector<32x8xf32>, vector<1x8xf32> -> vector<1x8xf32>
    %c0_20 = arith.constant 0 : index
    %c0_21 = arith.constant 0 : index
    %21 = memref.load %arg9[%c0_20, %c0_21] : memref<1x1xf32, #tpu.memory_space<smem>>
    %22 = vector.broadcast %21 : f32 to vector<1x8xf32>
    %23 = arith.addf %20, %22 : vector<1x8xf32>
    %c0_22 = arith.constant 0 : index
    %c0_23 = arith.constant 0 : index
    %24 = vector.load %arg10[%c0_22, %c0_23] : memref<1x8xf32, #tpu.memory_space<vmem>>, vector<1x8xf32>
    tpu.vector_store %arg10[%c0_22, %c0_23], %23 {strides = array<i32>} : memref<1x8xf32, #tpu.memory_space<vmem>>, vector<1x8xf32>,
    return
  }
  func.func @transform_0(%arg0: i32) -> (i32, i32) {
    %c0_i32 = arith.constant 0 : i32
    %c0_i32_0 = arith.constant 0 : i32
    return %arg0, %c0_i32 : i32, i32
  }
  func.func @transform_1(%arg0: i32) -> (i32, i32) {
    %c0_i32 = arith.constant 0 : i32
    %c0_i32_0 = arith.constant 0 : i32
    return %arg0, %c0_i32 : i32, i32
  }
  func.func @transform_2(%arg0: i32) -> (i32, i32) {
    %c0_i32 = arith.constant 0 : i32
    %c0_i32_0 = arith.constant 0 : i32
    %c0_i32_1 = arith.constant 0 : i32
    return %c0_i32, %c0_i32_0 : i32, i32
  }
  func.func @transform_3(%arg0: i32) -> (i32, i32) {
    %c0_i32 = arith.constant 0 : i32
    %c0_i32_0 = arith.constant 0 : i32
    %c0_i32_1 = arith.constant 0 : i32
    return %c0_i32, %c0_i32_0 : i32, i32
  }
  func.func @transform_4(%arg0: i32) -> (i32, i32) {
    %c0_i32 = arith.constant 0 : i32
    %c0_i32_0 = arith.constant 0 : i32
    %c0_i32_1 = arith.constant 0 : i32
    return %c0_i32, %c0_i32_0 : i32, i32
  }
  func.func @transform_5(%arg0: i32) -> (i32, i32) {
    %c0_i32 = arith.constant 0 : i32
    %c0_i32_0 = arith.constant 0 : i32
    %c0_i32_1 = arith.constant 0 : i32
    return %c0_i32, %c0_i32_0 : i32, i32
  }
  func.func @transform_6(%arg0: i32) -> (i32, i32) {
    %c0_i32 = arith.constant 0 : i32
    %c0_i32_0 = arith.constant 0 : i32
    %c0_i32_1 = arith.constant 0 : i32
    return %c0_i32, %c0_i32_0 : i32, i32
  }
  func.func @transform_7(%arg0: i32) -> (i32, i32) {
    %c0_i32 = arith.constant 0 : i32
    %c0_i32_0 = arith.constant 0 : i32
    %c0_i32_1 = arith.constant 0 : i32
    return %c0_i32, %c0_i32_0 : i32, i32
  }
  func.func @transform_8(%arg0: i32) -> (i32, i32) {
    %c0_i32 = arith.constant 0 : i32
    %c0_i32_0 = arith.constant 0 : i32
    %c0_i32_1 = arith.constant 0 : i32
    return %c0_i32, %c0_i32_0 : i32, i32
  }
  func.func @transform_9(%arg0: i32) -> (i32, i32) {
    %c0_i32 = arith.constant 0 : i32
    %c0_i32_0 = arith.constant 0 : i32
    return %c0_i32, %arg0 : i32, i32
  }
}

</mosaic_0001>

<bundles_post_ra>
// kernel: _lambda_.1
= control target key start
LH: loop header
LB: loop body
LE: loop exit
PB: predicated region body
PF: predicated region fallthrough
CT: control target
= control target key end

     0   :  { %15 = vsyncpa [#allocation4], 0  ;;  %s914_s0 = inlined_call_operand.vmem [shape: f32[8,8], index: 0, kind: input, shape index: {}]   ;;  %s915_s1 = inlined_call_operand.vmem [shape: f32[8,4], index: 1, kind: input, shape index: {}]   ;;  %s916_s2 = inlined_call_operand.hbm [shape: f32[32,8], index: 2, kind: input, shape index: {}]   ;;  %s917_s3 = inlined_call_operand.hbm [shape: f32[32,4], index: 3, kind: input, shape index: {}]   ;;  %s918_s4 = inlined_call_operand.hbm [shape: f32[32,1], index: 4, kind: input, shape index: {}]   ;;  %s919_s5 = inlined_call_operand.hbm [shape: f32[32,32], index: 5, kind: input, shape index: {}]   ;;  %s920_s6 = inlined_call_operand.hbm [shape: f32[32,1], index: 6, kind: input, shape index: {}]   ;;  %s921_s7 = inlined_call_operand.vmem [shape: f32[1,32], index: 7, kind: input, shape index: {}]   ;;  %s922_s8 = inlined_call_operand.<no memory space> [shape: f32[1,1], index: 8, kind: input, shape index: {}]   ;;  %s923_s9 = inlined_call_operand.hbm [shape: f32[1,8], index: 9, kind: output, shape index: {}]  }
   0x1   :  { %16 = vsyncpa [#allocation7], 0 }
   0x2   :  { %17 = vsyncpa [#allocation10], 0 }
   0x3   :  { %18 = vsyncpa [#allocation5], 0  ;;  %s791_s30 = smov [#allocation6]   ;;  %s792_s11 = smov [#allocation9]  }
   0x4   :  { %s40_s10 = sshll.u32 %s791_s30, 4  ;;  %s64_s12 = sshll.u32 %s792_s11, 4  ;;  %s41_s10 = int_to_ptr.vmem [resolvable:$true] %s40_s10  ;;  %s65_s12 = int_to_ptr.vmem [resolvable:$true] %s64_s12 }
   0x5   :  { %s671_s13 = scalar_lea.vmem %s41_s10, 512  ;;  %p676_p1 = scmp.lt.s32.totalorder %s41_s10, %s41_s10 }
   0x6   :  { %p672_p0 = scmp.ne.s32.totalorder %s41_s10, %s671_s13  ;;  %p677_p2 = scmp.lt.s32.totalorder %s671_s13, %s671_s13 }
   0x8   :  { %p678_p3 = por %p677_p2, %p676_p1 }
   0xa   :  { %p679_p4 = pnand %p678_p3, %p672_p0 }
   0xc   :  { %682 = shalt.err (!%p679_p4)
}
   0xd   :  { %s793_s14 = smov 128   ;;  %s794_s15 = smov 8  }
   0xe   :  { %46 = dma.hbm_to_vmem [thread:$0]  %s917_s3, 512, %s41_s10, [#allocation7], %s793_s14, %s793_s14, %s794_s15  }
   0xf   :  { %s691_s18 = scalar_lea.vmem %s65_s12, 512  ;;  %p696_p6 = scmp.lt.s32.totalorder %s65_s12, %s65_s12 }
  0x10   :  { %p692_p5 = scmp.ne.s32.totalorder %s65_s12, %s691_s18  ;;  %p697_p7 = scmp.lt.s32.totalorder %s691_s18, %s691_s18 }
  0x12   :  { %p698_p8 = por %p697_p7, %p696_p6 }
  0x14   :  { %p699_p9 = pnand %p698_p8, %p692_p5 }
  0x16   :  { %702 = shalt.err (!%p699_p9)
}
  0x17   :  { %70 = dma.hbm_to_vmem [thread:$0]  %s919_s5, 512, %s65_s12, [#allocation10], %s793_s14, %s793_s14, %s794_s15  }
  0x18   :  { %s795_s21 = smov [#allocation3]   ;;  %s796_s23 = smov [#allocation8]  }
  0x19   :  { %s28_s22 = sshll.u32 %s795_s21, 4  ;;  %s52_s24 = sshll.u32 %s796_s23, 4  ;;  %s29_s22 = int_to_ptr.vmem [resolvable:$true] %s28_s22  ;;  %s53_s24 = int_to_ptr.vmem [resolvable:$true] %s52_s24 }
  0x1a   :  { %s711_s3 = scalar_lea.vmem %s29_s22, 512  ;;  %p716_p11 = scmp.lt.s32.totalorder %s29_s22, %s29_s22 }
  0x1b   :  { %p712_p10 = scmp.ne.s32.totalorder %s29_s22, %s711_s3  ;;  %p717_p12 = scmp.lt.s32.totalorder %s711_s3, %s711_s3 }
  0x1d   :  { %p718_p13 = por %p717_p12, %p716_p11 }
  0x1f   :  { %p719_p0 = pnand %p718_p13, %p712_p10 }
  0x21   :  { %722 = shalt.err (!%p719_p0)
}
  0x22   :  { %34 = dma.hbm_to_vmem [thread:$0]  %s916_s2, 512, %s29_s22, [#allocation4], %s793_s14, %s793_s14, %s794_s15  }
  0x23   :  { %s731_s5 = scalar_lea.vmem %s53_s24, 512  ;;  %p736_p2 = scmp.lt.s32.totalorder %s53_s24, %s53_s24 }
  0x24   :  { %p732_p1 = scmp.ne.s32.totalorder %s53_s24, %s731_s5  ;;  %p737_p3 = scmp.lt.s32.totalorder %s731_s5, %s731_s5 }
  0x26   :  { %p738_p4 = por %p737_p3, %p736_p2 }
  0x28   :  { %p739_p5 = pnand %p738_p4, %p732_p1 }
  0x2a   :  { %742 = shalt.err (!%p739_p5)
}
  0x2b   :  { %58 = dma.hbm_to_vmem [thread:$0]  %s918_s4, 512, %s53_s24, [#allocation7], %s793_s14, %s793_s14, %s794_s15  }
  0x2c   :  { %s797_s29 = smov [#allocation11]  }
  0x2d   :  { %s76_s30 = sshll.u32 %s797_s29, 4  ;;  %s77_s30 = int_to_ptr.vmem [resolvable:$true] %s76_s30 }
  0x2e   :  { %s751_s10 = scalar_lea.vmem %s77_s30, 512  ;;  %p756_p7 = scmp.lt.s32.totalorder %s77_s30, %s77_s30 }
  0x2f   :  { %p752_p6 = scmp.ne.s32.totalorder %s77_s30, %s751_s10  ;;  %p757_p8 = scmp.lt.s32.totalorder %s751_s10, %s751_s10 }
  0x31   :  { %p758_p9 = por %p757_p8, %p756_p7 }
  0x33   :  { %p759_p10 = pnand %p758_p9, %p752_p6 }
  0x35   :  { %762 = shalt.err (!%p759_p10)
}
  0x36   :  { %82 = dma.hbm_to_vmem [thread:$0]  %s920_s6, 512, %s77_s30, [#allocation10], %s793_s14, %s793_s14, %s794_s15  }
  0x37   :  { %783 = dma.done.wait [#allocation4], 512  }
  0x38   :  { %784 = vsyncadd [#allocation4], 4294966784 }
  0x39   :  { %785 = dma.done.wait [#allocation7], 1024  }
  0x3a   :  { %786 = vsyncadd [#allocation7], 4294966272 }
  0x3b   :  { %787 = dma.done.wait [#allocation10], 1024  }
  0x3c   :  { %788 = vsyncadd [#allocation10], 4294966272  ;;  %v798_v0 = vmov 0   ;;  %vm112_vm0 = vcmask 31744   ;;  %vm213_vm1 = vcmask 64512   ;;  %v111_v1 = vld [vmem:[%s915_s1] sm:$0xff] }
  0x3d   :  { %661 = vset.pattern.permute.xlu0 %v798_v0  ;;  %662 = vset.pattern.permute.xlu1 %v798_v0  ;;  %v106_v2 = vld [vmem:[%s914_s0] sm:$0xff]  ;;  %v108_v5 = vld [vmem:[#allocation6 + $0x8] sm:$0xff]  ;;  %v109_v7 = vld [vmem:[#allocation6 + $0x10] sm:$0xff]  ;;  %vm374_vm2 = vcmask 261120   ;;  %v799_v47 = vmov 0.0   ;;  %vm800_vm3 = vmmov 0  }
  0x3e   :  { %v107_v3 = vld [vmem:[#allocation6] sm:$0xff]  ;;  %609 = vmatprep.subr.msk.mxu0 %vm112_vm0, %v111_v1  ;;  %617 = vmatprep.subr.msk.mxu1 %vm213_vm1, %v106_v2  ;;  %v103_v6 = vld [vmem:[#allocation3 + $0x8] sm:$0xff]  ;;  %v104_v8 = vld [vmem:[#allocation3 + $0x10] sm:$0xff]  ;;  %s801_s15 = smov [#allocation12]   ;;  %vm552_vm4 = vcmask 57344  }
  0x3f   :  { %v102_v4 = vld [vmem:[#allocation3] sm:$0xff]  ;;  %610 = vmatpush3.xpose.msk.msra.mxu0 %vm112_vm0, %v111_v1  ;;  %618 = vmatpush3.xpose.msk.msra.mxu1 %vm213_vm1, %v106_v2  ;;  %v317_v9 = vld [vmem:[#allocation8 + $0x18] sm:$0xff]  ;;  %v315_v10 = vld [vmem:[#allocation8 + $0x8] sm:$0xff]  ;;  %v478_v1 = vstv %s922_s8  ;;  %s560_s17 = sshll.u32 %s801_s15, 4  ;;  %s561_s17 = int_to_ptr.vmem [resolvable:$true] %s560_s17 }
  0x40   :  { %611 = vmatprep.mubr.msk.f32.mxu0 %vm112_vm0, %v107_v3  ;;  %619 = vmatprep.mubr.msk.f32.mxu1 %vm213_vm1, %v102_v4  ;;  %v316_v11 = vld [vmem:[#allocation8 + $0x10] sm:$0xff]  ;;  %v110_v12 = vld [vmem:[#allocation6 + $0x18] sm:$0xff]  ;;  %v314_v14 = vld [vmem:[#allocation8] sm:$0xff]  ;;  %s763_s18 = scalar_lea.vmem %s561_s17, 16  ;;  %s767_s19 = scalar_lea.vmem %s561_s17, 32 }
  0x41   :  { %335 = vperm.xlu0 %661, %v317_v9   ;;  %v105_v13 = vld [vmem:[#allocation3 + $0x18] sm:$0xff]  ;;  %325 = vperm.xlu1 %662, %v315_v10   ;;  %v352_v16 = vld [vmem:[#allocation11 + $0x10] sm:$0xff]  ;;  %v351_v17 = vld [vmem:[#allocation11 + $0x8] sm:$0xff]  ;;  %p764_p11 = scmp.ne.s32.totalorder %s561_s17, %s763_s18  ;;  %p768_p12 = scmp.lt.s32.totalorder %s561_s17, %s561_s17 }
  0x42   :  { %612 = vmatmul.mubr.msk.f32.vlgmr.msra.gmra.mxu0 %vm112_vm0, %v108_v5  ;;  %620 = vmatmul.mubr.msk.f32.vlgmr.msra.gmra.mxu1 %vm213_vm1, %v103_v6  ;;  %v353_v15 = vld [vmem:[#allocation11 + $0x18] sm:$0xff]  ;;  %v350_v18 = vld [vmem:[#allocation11] sm:$0xff]  ;;  %v347_v44 = vld [vmem:[#allocation9 + $0x8] sm:$0xff]  ;;  %p769_p13 = scmp.lt.s32.totalorder %s767_s19, %s763_s18 }
  0x43   :  { %614 = vmatprep.mubr.msk.f32.mxu0 %vm112_vm0, %v109_v7  ;;  %622 = vmatprep.mubr.msk.f32.mxu1 %vm213_vm1, %v104_v8  ;;  %v346_v19 = vld [vmem:[#allocation9] sm:$0xff]  ;;  %v348_v45 = vld [vmem:[#allocation9 + $0x10] sm:$0xff]  ;;  %v349_v46 = vld [vmem:[#allocation9 + $0x18] sm:$0xff] }
  0x44   :  { %639 = vmatprep.subr.mxu1 %v799_v47  ;;  %v476_v0 = vld [vmem:[%s921_s7] sm:$0x1]  ;;  %p770_p0 = por %p769_p13, %p768_p12 }
  0x45   :  { %330 = vperm.xlu0 %661, %v316_v11   ;;  %320 = vperm.xlu1 %662, %v314_v14  }
  0x46   :  { %615 = vmatmul.mubr.msk.f32.gmra.mxu0 %vm112_vm0, %v110_v12  ;;  %623 = vmatmul.mubr.msk.f32.gmra.mxu1 %vm213_vm1, %v105_v13  ;;  %p771_p1 = pnand %p770_p0, %p764_p11 }
  0x47   :  { %633 = vmatprep.mubr.msk.f32.mxu0 %vm374_vm2, %v346_v19  ;;  %647 = vmatprep.mubr.msk.f32.mxu1 %vm800_vm3, %v799_v47 }
  0x49   :  { %371 = vperm.xlu0 %661, %v353_v15   ;;  %366 = vperm.xlu1 %662, %v352_v16  }
  0x4d   :  { %361 = vperm.xlu0 %661, %v351_v17   ;;  %356 = vperm.xlu1 %662, %v350_v18  }
  0xbc   :  { %v336_v22 = vpop.permute.xlu0 %335  ;;  %v326_v25 = vpop.permute.xlu1 %325 }
  0xc0   :  { %v331_v35 = vpop.permute.xlu0 %330  ;;  %v321_v39 = vpop.permute.xlu1 %320 }
  0xc4   :  { %v372_v48 = vpop.permute.xlu0 %371  ;;  %v367_v50 = vpop.permute.xlu1 %366 }
  0xc8   :  { %v362_v54 = vpop.permute.xlu0 %361  ;;  %v357_v59 = vpop.permute.xlu1 %356 }
 0x102   :  { %v613_v20 = vpop.f32.mrf.mxu0  ;;  %v621_v21 = vpop.f32.mrf.mxu1 }
 0x103   :  { %v301_v28 = vadd.f32 %v621_v21, %v613_v20 }
 0x104   :  { %v194_v23 = vpop.f32.mrf.mxu0  ;;  %v295_v24 = vpop.f32.mrf.mxu1 }
 0x105   :  { %v296_v32 = vadd.f32 %v295_v24, %v194_v23  ;;  %v339_v36 = vadd.f32 %v326_v25, %v301_v28 }
 0x106   :  { %v616_v26 = vpop.f32.mrf.mxu0  ;;  %v624_v27 = vpop.f32.mrf.mxu1 }
 0x107   :  { %v311_v29 = vadd.f32 %v624_v27, %v616_v26  ;;  %v338_v40 = vadd.f32 %v321_v39, %v296_v32  ;;  %v343_v42 = vmax.f32 %v339_v36, 0.0 }
 0x108   :  { %v204_v30 = vpop.f32.mrf.mxu0  ;;  %v305_v31 = vpop.f32.mrf.mxu1 }
 0x109   :  { %v341_v33 = vadd.f32 %v336_v22, %v311_v29  ;;  %v306_v34 = vadd.f32 %v305_v31, %v204_v30  ;;  %v342_v43 = vmax.f32 %v338_v40, 0.0 }
 0x10b   :  { %v345_v37 = vmax.f32 %v341_v33, 0.0  ;;  %v340_v38 = vadd.f32 %v331_v35, %v306_v34 }
 0x10d   :  { %v344_v41 = vmax.f32 %v340_v38, 0.0  ;;  %625 = vmatprep.subr.mxu0 %v345_v37 }
 0x10e   :  { %626 = vmatpush3.msra.mxu0 %v345_v37 }
 0x10f   :  { %627 = vmatprep.subr.mxu0 %v344_v41 }
 0x110   :  { %628 = vmatpush3.msra.mxu0 %v344_v41 }
 0x111   :  { %629 = vmatprep.subr.mxu0 %v343_v42 }
 0x112   :  { %630 = vmatpush3.msra.mxu0 %v343_v42 }
 0x113   :  { %631 = vmatprep.subr.mxu0 %v342_v43 }
 0x114   :  { %632 = vmatpush3.msra.mxu0 %v342_v43 }
 0x115   :  { %634 = vmatmul.mubr.msk.f32.vlgmr.msra.gmra.mxu0 %vm374_vm2, %v347_v44 }
 0x116   :  { %636 = vmatprep.mubr.msk.f32.mxu0 %vm374_vm2, %v348_v45 }
 0x119   :  { %637 = vmatmul.mubr.msk.f32.gmra.mxu0 %vm374_vm2, %v349_v46 }
 0x1d5   :  { %v635_v49 = vpop.f32.mrf.mxu0 }
 0x1d6   :  { %v459_v56 = vadd.f32 %v635_v49, %v362_v54 }
 0x1d7   :  { %v453_v51 = vpop.f32.mrf.mxu0 }
 0x1d8   :  { %v454_v60 = vadd.f32 %v453_v51, %v357_v59  ;;  %v473_v62 = vmax.f32 %v459_v56, 0.0 }
 0x1d9   :  { %v638_v52 = vpop.f32.mrf.mxu0 }
 0x1da   :  { %v469_v53 = vadd.f32 %v638_v52, %v372_v48  ;;  %v472_v63 = vmax.f32 %v454_v60, 0.0 }
 0x1db   :  { %v463_v55 = vpop.f32.mrf.mxu0 }
 0x1dc   :  { %v475_v57 = vmax.f32 %v469_v53, 0.0  ;;  %v464_v58 = vadd.f32 %v463_v55, %v367_v50 }
 0x1de   :  { %v474_v61 = vmax.f32 %v464_v58, 0.0  ;;  %640 = vmatpush3.msra.mxu1 %v475_v57 }
 0x1df   :  { %641 = vmatprep.subr.mxu1 %v799_v47 }
 0x1e0   :  { %642 = vmatpush3.msra.mxu1 %v474_v61 }
 0x1e1   :  { %643 = vmatprep.subr.mxu1 %v799_v47 }
 0x1e2   :  { %644 = vmatpush3.msra.mxu1 %v473_v62 }
 0x1e3   :  { %645 = vmatprep.subr.mxu1 %v799_v47 }
 0x1e4   :  { %646 = vmatpush3.msra.mxu1 %v472_v63 }
 0x1e5   :  { %648 = vmatmul.mubr.msk.f32.vlgmr.msra.gmra.mxu1 %vm374_vm2, %v476_v0 }
 0x2a5   :  { %v548_v2 = vpop.f32.mrf.mxu1 }
 0x2a6   :  { %v549_v3 = vadd.f32 %v548_v2, %v478_v1 }
 0x2a7   :  { %v649_v4 = vpop.f32.mrf.mxu1 }
 0x2a8   :  { %553 = vst.msk [vmem:[#allocation12] sm:$0x1] %vm552_vm4, %v549_v3 }
 0x2a9   :  { %774 = shalt.err (!%p771_p1)
}
 0x2aa   :  { %563 = dma.vmem_to_hbm [thread:$0]  %s561_s17, 16, %s923_s9, [#allocation5]  }
 0x2ab   :  { %789 = dma.done.wait [#allocation5], 16  }
 0x2ac   :  { %790 = vsyncadd [#allocation5], 4294967280 }
 0x2ad   :  { %567 = vsyncpa [#allocation4], 1 }
 0x2ae   :  { %568 = vsyncpa [#allocation7], 1 }
 0x2af   :  { %569 = vsyncpa [#allocation10], 1 }
 0x2b0   :  { %570 = vsyncpa [#allocation5], 1 }

</bundles_post_ra>
